<compile_context>
chip_gen: v6e
topology: v6e:2x2x1
jax: 0.10.0
libtpu: 0.0.40
codegen_flags: <defaults>
</compile_context>

<pallas_src>
import functools

import jax
import jax.numpy as jnp
from jax import lax
from jax.experimental import pallas as pl
from jax.experimental.pallas import tpu as pltpu


# ----------------------------------------------------------------------------
# Fused Pallas kernel: conv-GEMM(+bias) + ReLU + pool-matmul + Linear + ReLU
#                      + [identity | heads] matmul -> single output slab
# ----------------------------------------------------------------------------
def lll_net_kernel(patches_ref, pool_ref, wcomb_ref, whout_ref, bias_ref,
                   out_ref, *, kp, f):
    # 1) Conv as one lane-dense GEMM on the MXU, bias folded into the
    #    contraction (ones row in patches, bias column in the weight):
    #    [Cout, Kp](bf16) x [Kp, B*HW](bf16) -> [Cout, B*HW](f32)
    conv = jnp.dot(wcomb_ref[:, :kp], patches_ref[...],
                   preferred_element_type=jnp.float32)
    conv = jnp.maximum(conv, 0.0)                              # ReLU (f32)

    # 2) Global average pool as ONE MXU matmul against the block-diagonal
    #    pool matrix (1/HW scale baked into pool_ref):
    #    [Cout, B*HW] x [B*HW, B] -> [Cout, B]  (f32 accumulate)
    pooled_t = jnp.dot(conv.astype(jnp.bfloat16), pool_ref[...],
                       preferred_element_type=jnp.float32)

    # 3) Linear + ReLU -> features.  Contract over Cout (axis 0 of both
    #    operands) so no explicit transpose of pooled_t is needed.
    feat = lax.dot_general(pooled_t.astype(jnp.bfloat16),
                           wcomb_ref[:, 128:128 + f],
                           dimension_numbers=(((0,), (0,)), ((), ())),
                           preferred_element_type=jnp.float32)
    feat = jnp.maximum(feat + bias_ref[:, :f], 0.0)            # [B, F] (f32)

    # 4) Single lane-dense output slab: feat x [I_F | W_heads(padded)] gives
    #    [features | all-head logits] in one [B, 128] matmul; add the shared
    #    (lane-aligned) bias row.  One full-width store, one output DMA.
    out_ref[...] = jnp.dot(feat.astype(jnp.bfloat16), whout_ref[...],
                           preferred_element_type=jnp.float32) + bias_ref[:, 128:]


# ----------------------------------------------------------------------------
# Wrapper
# ----------------------------------------------------------------------------
def _im2col_3x3_same_T(x):
    """x: [B, C, H, W] NCHW -> patches [C*9, B*H*W]; K order = (C, kh, kw)."""
    B, C, H, W = x.shape
    xp = jnp.pad(x, ((0, 0), (0, 0), (1, 1), (1, 1)))
    taps = []
    for kh in range(3):
        for kw in range(3):
            taps.append(xp[:, :, kh:kh + H, kw:kw + W])        # [B, C, H, W]
    p = jnp.stack(taps, axis=2)                                # [B, C, 9, H, W]
    p = p.transpose(1, 2, 0, 3, 4).reshape(C * 9, B * H * W)   # [K, B*HW]
    return p


def lll_net_pallas(x, params):
    """x: [B, Cin, H, W] f32 -> (features [B, F] f32, logits [B, n_heads*C] f32)."""
    B, Cin, H, W = x.shape
    HW = H * W
    K = Cin * 9
    Kp = K + 1                                   # +1 ones row for conv bias
    Cout = params["wconv"].shape[0]
    F = params["w1"].shape[1]
    n_heads, _, C = params["w_heads"].shape
    NHC = n_heads * C
    OUT_W = 128                                  # lane-dense output width
    assert F + NHC <= OUT_W and F <= 128 and Kp <= 128

    # --- operand construction (all MXU operands bf16, biases f32) -----------
    # im2col + ones row (folds the conv bias into the GEMM contraction).
    patches = _im2col_3x3_same_T(x)                                  # [K, B*HW]
    patches_aug = jnp.concatenate(
        [patches, jnp.ones((1, B * HW), jnp.float32)], axis=0
    ).astype(jnp.bfloat16)                                           # [Kp, B*HW]

    # Block-diagonal pool matrix with the mean scale baked in.
    # 1/HW is a power of two at 16x16 -> exact in bf16.
    pool_mat = (jnp.kron(jnp.eye(B, dtype=jnp.float32),
                         jnp.ones((HW, 1), jnp.float32)) / HW
                ).astype(jnp.bfloat16)                               # [B*HW, B]

    # Combined backbone weights: lanes [0:Kp] = conv weight (+bias column),
    # lanes [128:128+F] = w1 -- both 128-lane aligned so the in-kernel static
    # slices need no relayout.
    wconv_aug = jnp.concatenate(
        [params["wconv"].reshape(Cout, K), params["bconv"].reshape(Cout, 1)],
        axis=1)                                                      # [Cout, Kp]
    wcomb = jnp.zeros((Cout, 2 * 128), jnp.float32)
    wcomb = wcomb.at[:, :Kp].set(wconv_aug)
    wcomb = wcomb.at[:, 128:128 + F].set(params["w1"])
    wcomb = wcomb.astype(jnp.bfloat16)                               # [Cout, 256]

    # Output-producing weight: [I_F | W_heads | 0] so one matmul emits the
    # whole [features | logits] slab.
    wh_flat = params["w_heads"].transpose(1, 0, 2).reshape(F, NHC)   # [F, NH*C]
    whout = jnp.zeros((F, OUT_W), jnp.float32)
    whout = whout.at[:, :F].set(jnp.eye(F, dtype=jnp.float32))
    whout = whout.at[:, F:F + NHC].set(wh_flat)
    whout = whout.astype(jnp.bfloat16)                               # [F, 128]

    # All biases in one f32 row (single DMA): b1 at lanes [0:F] (pre-ReLU
    # feature bias), output-slab bias at lanes [128:256] (zeros under the
    # identity block, head biases under the head block).
    bias_row = jnp.zeros((1, 2 * OUT_W), jnp.float32)
    bias_row = bias_row.at[0, :F].set(params["b1"])
    bias_row = bias_row.at[0, 128 + F:128 + F + NHC].set(
        params["b_heads"].reshape(NHC))

    kernel = functools.partial(lll_net_kernel, kp=Kp, f=F)
    out = pl.pallas_call(
        kernel,
        out_shape=jax.ShapeDtypeStruct((B, OUT_W), jnp.float32),
        grid=(1,),
        in_specs=[
            pl.BlockSpec((Kp, B * HW), lambda i: (0, 0)),
            pl.BlockSpec((B * HW, B), lambda i: (0, 0)),
            pl.BlockSpec((Cout, 2 * 128), lambda i: (0, 0)),
            pl.BlockSpec((F, OUT_W), lambda i: (0, 0)),
            pl.BlockSpec((1, 2 * OUT_W), lambda i: (0, 0)),
        ],
        out_specs=pl.BlockSpec((B, OUT_W), lambda i: (0, 0)),
        compiler_params=pltpu.CompilerParams(
            dimension_semantics=("arbitrary",),
            # Let XLA fuse the im2col pad/stack/transpose/concat into the
            # patches operand instead of materializing it in HBM.
            allow_input_fusion=[True, False, False, False, False],
        ),
    )(patches_aug, pool_mat, wcomb, whout, bias_row)

    feat = out[:, :F]                    # bf16-rounded features (see header)
    logits = out[:, F:F + NHC]           # all heads, concatenated
    return feat, logits


@functools.partial(jax.jit, static_argnames=("return_features",))
def lll_net_forward(x, params, return_features=False):
    """Pallas implementation of LLL_Net.forward (multi-head)."""
    feat, logits = lll_net_pallas(x, params)
    n_heads = params["w_heads"].shape[0]
    y = jnp.split(logits, n_heads, axis=1)       # list of [B, C], one per head
    if return_features:
        return y, feat
    return y


# ----------------------------------------------------------------------------
# Pure-JAX reference (f32) for correctness checking
# ----------------------------------------------------------------------------
def reference_forward(x, params):
    conv = lax.conv_general_dilated(
        x, params["wconv"], window_strides=(1, 1), padding="SAME",
        dimension_numbers=("NCHW", "OIHW", "NCHW"))
    conv = jnp.maximum(conv + params["bconv"][None, :, None, None], 0.0)
    pooled = conv.mean(axis=(2, 3))                                   # [B, Cout]
    feat = jnp.maximum(pooled @ params["w1"] + params["b1"], 0.0)     # [B, F]
    ys = [feat @ params["w_heads"][h] + params["b_heads"][h]
          for h in range(params["w_heads"].shape[0])]
    return ys, feat


# ----------------------------------------------------------------------------
# Deterministic parameter construction (synthetic, no checkpoint load)
# ----------------------------------------------------------------------------
def init_params(key, cin=4, cout=8, out_size=32, taskcla=((0, 5), (1, 5), (2, 5))):
    n_heads = len(taskcla)
    n_cls = taskcla[0][1]
    ks = jax.random.split(key, 6)
    return {
        "wconv": 0.1 * jax.random.normal(ks[0], (cout, cin, 3, 3), jnp.float32),
        "bconv": 0.05 * jax.random.normal(ks[1], (cout,), jnp.float32),
        "w1":    0.1 * jax.random.normal(ks[2], (cout, out_size), jnp.float32),
        "b1":    0.05 * jax.random.normal(ks[3], (out_size,), jnp.float32),
        # BBBLinear heads: posterior-mean weights/biases, stacked over heads.
        "w_heads": 0.1 * jax.random.normal(ks[4], (n_heads, out_size, n_cls),
                                           jnp.float32),
        "b_heads": 0.05 * jax.random.normal(ks[5], (n_heads, 1, n_cls),
                                            jnp.float32),
    }


if __name__ == "__main__":
    key = jax.random.PRNGKey(0)
    kx, kp = jax.random.split(key)

    # Input images, NCHW: batch=2, channels=4, spatial=16x16.
    x = jax.random.normal(kx, (2, 4, 16, 16), jnp.float32)
    params = init_params(kp)

    y_list, feats = lll_net_forward(x, params, return_features=True)
    jax.block_until_ready(feats)
    for y in y_list:
        jax.block_until_ready(y)

    assert feats.shape == (2, 32)
    assert len(y_list) == 3 and all(y.shape == (2, 5) for y in y_list)

    # Correctness check against f32 reference (kernel uses bf16 matmul operands).
    y_ref, feat_ref = reference_forward(x, params)
    assert jnp.allclose(feats, feat_ref, rtol=5e-2, atol=5e-2)
    for y, yr in zip(y_list, y_ref):
        assert jnp.allclose(y, yr, rtol=5e-2, atol=5e-2)

    print("KERNEL_OK")
</pallas_src>

<mosaic_0001>
module attributes {stable_mosaic.version = 11 : i64} {
  func.func @lll_net_kernel(%arg0: i32, %arg1: memref<37x512xbf16, #tpu.memory_space<vmem>>, %arg2: memref<512x2xbf16, #tpu.memory_space<vmem>>, %arg3: memref<8x256xbf16, #tpu.memory_space<vmem>>, %arg4: memref<32x128xbf16, #tpu.memory_space<vmem>>, %arg5: memref<1x256xf32, #tpu.memory_space<vmem>>, %arg6: memref<2x128xf32, #tpu.memory_space<vmem>>) attributes {dimension_semantics = [#tpu.dimension_semantics<arbitrary>], iteration_bounds = array<i64: 1>, scalar_prefetch = 0 : i64, scratch_operands = 0 : i64, tpu.core_type = #tpu.core_type<tc>, window_params = [{pipeline_mode = #tpu.pipeline_mode<synchronous>, transform_indices = @transform_0, window_bounds = array<i64: 37, 512>}, {pipeline_mode = #tpu.pipeline_mode<synchronous>, transform_indices = @transform_1, window_bounds = array<i64: 512, 2>}, {pipeline_mode = #tpu.pipeline_mode<synchronous>, transform_indices = @transform_2, window_bounds = array<i64: 8, 256>}, {pipeline_mode = #tpu.pipeline_mode<synchronous>, transform_indices = @transform_3, window_bounds = array<i64: 32, 128>}, {pipeline_mode = #tpu.pipeline_mode<synchronous>, transform_indices = @transform_4, window_bounds = array<i64: 1, 256>}, {pipeline_mode = #tpu.pipeline_mode<synchronous>, transform_indices = @transform_5, window_bounds = array<i64: 2, 128>}]} {
    %c0 = arith.constant 0 : index
    %c0_0 = arith.constant 0 : index
    %0 = vector.load %arg3[%c0, %c0_0] : memref<8x256xbf16, #tpu.memory_space<vmem>>, vector<8x37xbf16>
    %c0_1 = arith.constant 0 : index
    %c0_2 = arith.constant 0 : index
    %1 = vector.load %arg1[%c0_1, %c0_2] : memref<37x512xbf16, #tpu.memory_space<vmem>>, vector<37x512xbf16>
    %cst = arith.constant dense<0.000000e+00> : vector<8x512xf32>
    %2 = tpu.matmul %0, %1, %cst {dimension_numbers = #tpu.dot_dimension_numbers<[1], [0], [0], [1], [0, 0, 1, 1], [], []>} : vector<8x37xbf16>, vector<37x512xbf16>, vector<8x512xf32> -> vector<8x512xf32>
    %cst_3 = arith.constant 0.000000e+00 : f32
    %3 = vector.broadcast %cst_3 : f32 to vector<8x512xf32>
    %4 = arith.maximumf %2, %3 : vector<8x512xf32>
    %5 = arith.truncf %4 : vector<8x512xf32> to vector<8x512xbf16>
    %c0_4 = arith.constant 0 : index
    %c0_5 = arith.constant 0 : index
    %6 = vector.load %arg2[%c0_4, %c0_5] : memref<512x2xbf16, #tpu.memory_space<vmem>>, vector<512x2xbf16>
    %cst_6 = arith.constant dense<0.000000e+00> : vector<8x2xf32>
    %7 = tpu.matmul %5, %6, %cst_6 {dimension_numbers = #tpu.dot_dimension_numbers<[1], [0], [0], [1], [0, 0, 1, 1], [], []>} : vector<8x512xbf16>, vector<512x2xbf16>, vector<8x2xf32> -> vector<8x2xf32>
    %8 = arith.truncf %7 : vector<8x2xf32> to vector<8x2xbf16>
    %c0_7 = arith.constant 0 : index
    %c128 = arith.constant 128 : index
    %9 = vector.load %arg3[%c0_7, %c128] : memref<8x256xbf16, #tpu.memory_space<vmem>>, vector<8x32xbf16>
    %cst_8 = arith.constant dense<0.000000e+00> : vector<2x32xf32>
    %10 = tpu.matmul %8, %9, %cst_8 {dimension_numbers = #tpu.dot_dimension_numbers<[0], [0], [1], [1], [0, 1, 1, 1], [], []>} : vector<8x2xbf16>, vector<8x32xbf16>, vector<2x32xf32> -> vector<2x32xf32>
    %c0_9 = arith.constant 0 : index
    %c0_10 = arith.constant 0 : index
    %11 = vector.load %arg5[%c0_9, %c0_10] : memref<1x256xf32, #tpu.memory_space<vmem>>, vector<1x32xf32>
    %12 = vector.broadcast %11 : vector<1x32xf32> to vector<2x32xf32>
    %13 = arith.addf %10, %12 : vector<2x32xf32>
    %cst_11 = arith.constant 0.000000e+00 : f32
    %14 = vector.broadcast %cst_11 : f32 to vector<2x32xf32>
    %15 = arith.maximumf %13, %14 : vector<2x32xf32>
    %16 = arith.truncf %15 : vector<2x32xf32> to vector<2x32xbf16>
    %c0_12 = arith.constant 0 : index
    %c0_13 = arith.constant 0 : index
    %17 = vector.load %arg4[%c0_12, %c0_13] : memref<32x128xbf16, #tpu.memory_space<vmem>>, vector<32x128xbf16>
    %cst_14 = arith.constant dense<0.000000e+00> : vector<2x128xf32>
    %18 = tpu.matmul %16, %17, %cst_14 {dimension_numbers = #tpu.dot_dimension_numbers<[1], [0], [0], [1], [0, 0, 1, 1], [], []>} : vector<2x32xbf16>, vector<32x128xbf16>, vector<2x128xf32> -> vector<2x128xf32>
    %c0_15 = arith.constant 0 : index
    %c128_16 = arith.constant 128 : index
    %19 = vector.load %arg5[%c0_15, %c128_16] : memref<1x256xf32, #tpu.memory_space<vmem>>, vector<1x128xf32>
    %20 = vector.broadcast %19 : vector<1x128xf32> to vector<2x128xf32>
    %21 = arith.addf %18, %20 : vector<2x128xf32>
    %c0_17 = arith.constant 0 : index
    %c0_18 = arith.constant 0 : index
    %22 = vector.load %arg6[%c0_17, %c0_18] : memref<2x128xf32, #tpu.memory_space<vmem>>, vector<2x128xf32>
    tpu.vector_store %arg6[%c0_17, %c0_18], %21 {strides = array<i32>} : memref<2x128xf32, #tpu.memory_space<vmem>>, vector<2x128xf32>,
    return
  }
  func.func @transform_0(%arg0: i32) -> (i32, i32) {
    %c0_i32 = arith.constant 0 : i32
    %c0_i32_0 = arith.constant 0 : i32
    %c0_i32_1 = arith.constant 0 : i32
    return %c0_i32, %c0_i32_0 : i32, i32
  }
  func.func @transform_1(%arg0: i32) -> (i32, i32) {
    %c0_i32 = arith.constant 0 : i32
    %c0_i32_0 = arith.constant 0 : i32
    %c0_i32_1 = arith.constant 0 : i32
    return %c0_i32, %c0_i32_0 : i32, i32
  }
  func.func @transform_2(%arg0: i32) -> (i32, i32) {
    %c0_i32 = arith.constant 0 : i32
    %c0_i32_0 = arith.constant 0 : i32
    %c0_i32_1 = arith.constant 0 : i32
    return %c0_i32, %c0_i32_0 : i32, i32
  }
  func.func @transform_3(%arg0: i32) -> (i32, i32) {
    %c0_i32 = arith.constant 0 : i32
    %c0_i32_0 = arith.constant 0 : i32
    %c0_i32_1 = arith.constant 0 : i32
    return %c0_i32, %c0_i32_0 : i32, i32
  }
  func.func @transform_4(%arg0: i32) -> (i32, i32) {
    %c0_i32 = arith.constant 0 : i32
    %c0_i32_0 = arith.constant 0 : i32
    %c0_i32_1 = arith.constant 0 : i32
    return %c0_i32, %c0_i32_0 : i32, i32
  }
  func.func @transform_5(%arg0: i32) -> (i32, i32) {
    %c0_i32 = arith.constant 0 : i32
    %c0_i32_0 = arith.constant 0 : i32
    %c0_i32_1 = arith.constant 0 : i32
    return %c0_i32, %c0_i32_0 : i32, i32
  }
}

</mosaic_0001>

<bundles_post_ra>
// kernel: lll_net_forward.2
= control target key start
LH: loop header
LB: loop body
LE: loop exit
PB: predicated region body
PF: predicated region fallthrough
CT: control target
= control target key end

     0   :  { %s1424_s0 = inlined_call_operand.vmem [shape: bf16[512,2], index: 0, kind: input, shape index: {}]   ;;  %s1425_s1 = inlined_call_operand.vmem [shape: bf16[8,256], index: 1, kind: input, shape index: {}]   ;;  %s1426_s2 = inlined_call_operand.vmem [shape: bf16[32,128], index: 2, kind: input, shape index: {}]   ;;  %s1427_s3 = inlined_call_operand.vmem [shape: f32[1,256], index: 3, kind: input, shape index: {}]   ;;  %s1428_s4 = inlined_call_operand.vmem [shape: bf16[36,512], index: 4, kind: input, shape index: {}]   ;;  %s1429_s5 = inlined_call_operand.<no memory space> [shape: bf16[], index: 5, kind: input, shape index: {}]   ;;  %s1430_s6 = inlined_call_operand.vmem [shape: f32[2,128], index: 6, kind: output, shape index: {}]  }
   0x1   :  { %v11_v0 = vstv %s1429_s5 }
   0x2   :  { %v12_v1 = vunpack.i.l.bf16 %v11_v0 }
   0x3   :  { %v1010_v2 = vld [vmem:[%s1428_s4 + $0x40] sm:$0xff]   ;;  %v261_v3 = vlaneseq  ;;  %v1012_v4 = vld [vmem:[%s1428_s4 + $0x48] sm:$0xff]   ;;  %v1180_v6 = vld [vmem:[%s1428_s4 + $0x30] sm:$0xff]   ;;  %v1226_v17 = vmov 0   ;;  %v1227_v23 = vmov 0.0   ;;  %vm406_vm1 = vcmask 1041408  }
   0x4   :  { %v1179_v5 = vld [vmem:[%s1428_s4 + $0x20] sm:$0xff]   ;;  %v259_v8 = vunpack.c.l.bf16 %v1010_v2  ;;  %v282_v9 = vunpack.c.h.bf16 %v1010_v2  ;;  %v305_v10 = vunpack.c.l.bf16 %v1012_v4  ;;  %v328_v11 = vunpack.c.h.bf16 %v1012_v4  ;;  %v1182_v12 = vld [vmem:[%s1428_s4 + $0x28] sm:$0xff]   ;;  %v1183_v14 = vld [vmem:[%s1428_s4 + $0x38] sm:$0xff]   ;;  %454 = vmatprep.mubr.bf16.mxu0 %v1226_v17  ;;  %495 = vmatprep.mubr.bf16.mxu1 %v1226_v17 }
   0x5   :  { %v262_v7 = vshrl.u32 %v261_v3, 7  ;;  %v26_v15 = vld [vmem:[%s1428_s4] sm:$0xff]   ;;  %v1187_v16 = vld [vmem:[%s1428_s4 + $0x10] sm:$0xff]   ;;  %v1188_v22 = vld [vmem:[%s1428_s4 + $0x8] sm:$0xff]   ;;  %vm407_vm2 = vcmask 1042432   ;;  %v1228_v29 = vmov 65535   ;;  %v1019_v38 = vcombine.high %v1179_v5, %v1180_v6 }
   0x6   :  { %37 = vst [vmem:[#allocation7] sm:$0xff] %v26_v15   ;;  %v1189_v28 = vld [vmem:[%s1428_s4 + $0x18] sm:$0xff]   ;;  %v408_v30 = vsel %vm406_vm1, 4294967295, %v1228_v29  ;;  %v1021_v39 = vcombine.high %v1182_v12, %v1183_v14  ;;  %v1018_v45 = vcombine.low %v1179_v5, %v1180_v6  ;;  %v1020_v46 = vcombine.low %v1182_v12, %v1183_v14  ;;  %v341_v53 = vld [vmem:[%s1425_s1] sm:$0xf]  ;;  %v1196_v56 = vld [vmem:[%s1424_s0 + $0x70] sm:$0xff]  }
   0x7   :  { %v263_v13 = vadd.s32 32, %v262_v7  ;;  %v409_v31 = vsel %vm407_vm2, %v408_v30, 0  ;;  %v1017_v48 = vcombine.high %v1188_v22, %v1189_v28  ;;  %v1016_v50 = vcombine.low %v1188_v22, %v1189_v28  ;;  %v1192_v51 = vld [vmem:[%s1424_s0 + $0x78] sm:$0xff]   ;;  %v1197_v57 = vld [vmem:[%s1424_s0 + $0xf0] sm:$0xff]   ;;  %v1200_v60 = vld [vmem:[%s1424_s0 + $0x68] sm:$0xff]  }
   0x8   :  { %v1193_v52 = vld [vmem:[%s1424_s0 + $0xf8] sm:$0xff]   ;;  %vm402_vm3 = vcmask 302080   ;;  %v1198_v58 = vld [vmem:[%s1424_s0 + $0x30] sm:$0xff]   ;;  %v1201_v61 = vld [vmem:[%s1424_s0 + $0xe8] sm:$0xff]   ;;  %vm877_vm4 = vcmask 1043456   ;;  %vm1229_vm5 = vmmov 0  }
   0x9   :  { %vm264_vm0 = vcmp.lt.s32.totalorder %v263_v13, 36  ;;  %v1194_v54 = vld [vmem:[%s1424_s0 + $0x38] sm:$0xff]   ;;  %v1199_v59 = vld [vmem:[%s1424_s0 + $0xb0] sm:$0xff]   ;;  %v1202_v62 = vld [vmem:[%s1424_s0 + $0x28] sm:$0xff]   ;;  %vm873_vm6 = vcmask 64512   ;;  %vm946_vm7 = vcmask 261120  }
   0xa   :  { %v265_v18 = vsel %vm264_vm0, %v259_v8, %v12_v1  ;;  %v288_v19 = vsel %vm264_vm0, %v282_v9, %v12_v1  ;;  %v311_v20 = vsel %vm264_vm0, %v305_v10, %v12_v1  ;;  %v334_v21 = vsel %vm264_vm0, %v328_v11, %v12_v1  ;;  %v1195_v55 = vld [vmem:[%s1424_s0 + $0xb8] sm:$0xff]   ;;  %v1203_v63 = vld [vmem:[%s1424_s0 + $0xa8] sm:$0xff]   ;;  %v1204_v0 = vld [vmem:[%s1424_s0 + $0x60] sm:$0xff]  }
   0xb   :  { %v267_v24 = vpack.c.bf16 %v1227_v23, %v265_v18  ;;  %v290_v25 = vpack.c.bf16 %v1227_v23, %v288_v19  ;;  %v313_v26 = vpack.c.bf16 %v1227_v23, %v311_v20  ;;  %v336_v27 = vpack.c.bf16 %v1227_v23, %v334_v21  ;;  %v1205_v1 = vld [vmem:[%s1424_s0 + $0xe0] sm:$0xff]   ;;  %v1208_v4 = vld [vmem:[%s1424_s0 + $0x58] sm:$0xff]   ;;  %v1212_v8 = vld [vmem:[%s1424_s0 + $0x50] sm:$0xff]  }
   0xc   :  { %v1206_v2 = vld [vmem:[%s1424_s0 + $0x20] sm:$0xff]   ;;  %v1209_v5 = vld [vmem:[%s1424_s0 + $0xd8] sm:$0xff]   ;;  %v1213_v9 = vld [vmem:[%s1424_s0 + $0xd0] sm:$0xff]  }
   0xd   :  { %270 = vst [vmem:[#allocation7 + $0x40] sm:$0xf] %v267_v24  ;;  %293 = vst [vmem:[#allocation7 + $0x44] sm:$0xf] %v290_v25  ;;  %v342_v44 = vld [vmem:[#allocation7] sm:$0xff]  ;;  %v1210_v6 = vld [vmem:[%s1424_s0 + $0x18] sm:$0xff]  }
   0xe   :  { %316 = vst [vmem:[#allocation7 + $0x48] sm:$0xf] %v313_v26  ;;  %339 = vst [vmem:[#allocation7 + $0x4c] sm:$0xf] %v336_v27  ;;  %v1015_v47 = vcombine.high %v342_v44, %v1187_v16  ;;  %v1014_v49 = vcombine.low %v342_v44, %v1187_v16  ;;  %v1207_v3 = vld [vmem:[%s1424_s0 + $0xa0] sm:$0xff]   ;;  %v1211_v7 = vld [vmem:[%s1424_s0 + $0x98] sm:$0xff]  }
   0xf   :  { %v1214_v10 = vld [vmem:[%s1424_s0 + $0x10] sm:$0xff]   ;;  %v1216_v12 = vld [vmem:[%s1424_s0 + $0x48] sm:$0xff]   ;;  %v1220_v16 = vld [vmem:[%s1424_s0 + $0x40] sm:$0xff]  }
  0x10   :  { %v1215_v11 = vld [vmem:[%s1424_s0 + $0x90] sm:$0xff]   ;;  %v1217_v13 = vld [vmem:[%s1424_s0 + $0xc8] sm:$0xff]   ;;  %v1221_v17 = vld [vmem:[%s1424_s0 + $0xc0] sm:$0xff]  }
  0x11   :  { %v1218_v14 = vld [vmem:[%s1424_s0 + $0x8] sm:$0xff]   ;;  %v1222_v18 = vld [vmem:[%s1424_s0] sm:$0xff]  }
  0x12   :  { %v1219_v15 = vld [vmem:[%s1424_s0 + $0x88] sm:$0xff]   ;;  %v1223_v19 = vld [vmem:[%s1424_s0 + $0x80] sm:$0xff]  }
  0x14   :  { %v350_v32 = vld [vmem:[#allocation7 + $0x40] sm:$0x77] }
  0x15   :  { %v351_v33 = vld [vmem:[#allocation7 + $0x48] sm:$0x77]  ;;  %v1023_v34 = vcombine.high %v350_v32, %v350_v32  ;;  %v1022_v36 = vcombine.low %v350_v32, %v350_v32 }
  0x16   :  { %v1025_v35 = vcombine.high %v351_v33, %v351_v33  ;;  %v1024_v37 = vcombine.low %v351_v33, %v351_v33 }
  0x17   :  { %v414_v40 = vand.u32 %v1023_v34, %v409_v31  ;;  %v411_v42 = vand.u32 %v1022_v36, %v409_v31 }
  0x18   :  { %v420_v41 = vand.u32 %v1025_v35, %v409_v31  ;;  %v417_v43 = vand.u32 %v1024_v37, %v409_v31  ;;  %v849_v37 = vld [vmem:[%s1425_s1 + $0x4] sm:$0xf] }
  0x19   :  { %432 = vmatprep.subr.bf16.mxu0 %v414_v40 }
  0x1a   :  { %473 = vmatprep.subr.bf16.mxu1 %v420_v41  ;;  %433 = vmatpush1.bf16.msra.mxu0 %v411_v42 }
  0x1b   :  { %474 = vmatpush1.bf16.msra.mxu1 %v417_v43  ;;  %434 = vmatprep.subr.bf16.mxu0 %v1019_v38  ;;  %v879_v38 = vsel %vm877_vm4, %v849_v37, 0 }
  0x1c   :  { %475 = vmatprep.subr.bf16.mxu1 %v1021_v39  ;;  %v1224_v39 = vld [vmem:[%s1426_s2 + $0x8] sm:$0xff]  }
  0x1e   :  { %435 = vmatpush1.bf16.msra.mxu0 %v1018_v45 }
  0x1f   :  { %476 = vmatpush1.bf16.msra.mxu1 %v1020_v46  ;;  %436 = vmatprep.subr.bf16.mxu0 %v1015_v47 }
  0x20   :  { %477 = vmatprep.subr.bf16.mxu1 %v1017_v48 }
  0x22   :  { %437 = vmatpush1.bf16.msra.mxu0 %v1014_v49 }
  0x23   :  { %478 = vmatpush1.bf16.msra.mxu1 %v1016_v50  ;;  %1108 = vmatprep.subr.bf16.mxu0 %v1192_v51 }
  0x24   :  { %1130 = vmatprep.subr.bf16.mxu1 %v1193_v52 }
  0x25   :  { %1026 = vmatmul.mubr.msk.bf16.vlgmr.msra.gmra.mxu0 %vm402_vm3, %v341_v53 }
  0x26   :  { %1027 = vmatmul.mubr.msk.bf16.vlgmr.msra.gmra.mxu1 %vm402_vm3, %v341_v53  ;;  %1109 = vmatpush3.bf16.msra.mxu0 %v1194_v54  ;;  %v1060_v53 = vld [vmem:[%s1427_s3] ss:$0 sm:$0xff] }
  0x27   :  { %1131 = vmatpush3.bf16.msra.mxu1 %v1195_v55  ;;  %1110 = vmatprep.subr.bf16.mxu0 %v1196_v56 }
  0x28   :  { %1132 = vmatprep.subr.bf16.mxu1 %v1197_v57 }
  0x2a   :  { %1111 = vmatpush3.bf16.msra.mxu0 %v1198_v58 }
  0x2b   :  { %1133 = vmatpush3.bf16.msra.mxu1 %v1199_v59  ;;  %1112 = vmatprep.subr.bf16.mxu0 %v1200_v60 }
  0x2c   :  { %1134 = vmatprep.subr.bf16.mxu1 %v1201_v61  ;;  %v1062_v61 = vld [vmem:[%s1427_s3 + $0x1] ss:$0 sm:$0xff] }
  0x2e   :  { %1113 = vmatpush3.bf16.msra.mxu0 %v1202_v62 }
  0x2f   :  { %1135 = vmatpush3.bf16.msra.mxu1 %v1203_v63  ;;  %1114 = vmatprep.subr.bf16.mxu0 %v1204_v0 }
  0x30   :  { %1136 = vmatprep.subr.bf16.mxu1 %v1205_v1 }
  0x32   :  { %1115 = vmatpush3.bf16.msra.mxu0 %v1206_v2 }
  0x33   :  { %1137 = vmatpush3.bf16.msra.mxu1 %v1207_v3  ;;  %1116 = vmatprep.subr.bf16.mxu0 %v1208_v4 }
  0x34   :  { %1138 = vmatprep.subr.bf16.mxu1 %v1209_v5 }
  0x36   :  { %1117 = vmatpush3.bf16.msra.mxu0 %v1210_v6 }
  0x37   :  { %1139 = vmatpush3.bf16.msra.mxu1 %v1211_v7  ;;  %1118 = vmatprep.subr.bf16.mxu0 %v1212_v8 }
  0x38   :  { %1140 = vmatprep.subr.bf16.mxu1 %v1213_v9 }
  0x3a   :  { %1119 = vmatpush3.bf16.msra.mxu0 %v1214_v10 }
  0x3b   :  { %1141 = vmatpush3.bf16.msra.mxu1 %v1215_v11  ;;  %1120 = vmatprep.subr.bf16.mxu0 %v1216_v12 }
  0x3c   :  { %1142 = vmatprep.subr.bf16.mxu1 %v1217_v13 }
  0x3e   :  { %1121 = vmatpush3.bf16.msra.mxu0 %v1218_v14 }
  0x3f   :  { %1143 = vmatpush3.bf16.msra.mxu1 %v1219_v15  ;;  %1122 = vmatprep.subr.bf16.mxu0 %v1220_v16 }
  0x40   :  { %1144 = vmatprep.subr.bf16.mxu1 %v1221_v17 }
  0x42   :  { %1123 = vmatpush3.bf16.msra.mxu0 %v1222_v18 }
  0x43   :  { %1145 = vmatpush3.bf16.msra.mxu1 %v1223_v19  ;;  %1157 = vmatprep.subr.bf16.mxu0 %v1227_v23 }
  0x44   :  { %1163 = vmatprep.subr.bf16.mxu1 %v1227_v23 }
  0xe5   :  { %v456_v20 = vpop.f32.mrf.mxu0 }
  0xe6   :  { %v497_v21 = vpop.f32.mrf.mxu1  ;;  %v504_v22 = vmax.f32 %v456_v20, 0.0 }
  0xe7   :  { %v506_v24 = vmax.f32 %v497_v21, 0.0  ;;  %v458_v25 = vpop.f32.mrf.mxu0 }
  0xe8   :  { %v499_v26 = vpop.f32.mrf.mxu1  ;;  %v505_v27 = vmax.f32 %v458_v25, 0.0  ;;  %v508_v33 = vpack.c.bf16 %v504_v22, %v504_v22 }
  0xe9   :  { %v507_v28 = vmax.f32 %v499_v26, 0.0  ;;  %v460_v29 = vpop.f32.mrf.mxu0  ;;  %v510_v34 = vpack.c.bf16 %v506_v24, %v506_v24 }
  0xea   :  { %v501_v30 = vpop.f32.mrf.mxu1  ;;  %v509_v31 = vpack.c.bf16 %v505_v27, %v505_v27 }
  0xeb   :  { %v511_v32 = vpack.c.bf16 %v507_v28, %v507_v28  ;;  %v461_v35 = vpop.f32.mrf.mxu0 }
  0xec   :  { %v502_v36 = vpop.f32.mrf.mxu1  ;;  %800 = vmatprep.mubr.bf16.mxu0 %v509_v31 }
  0xed   :  { %840 = vmatprep.mubr.bf16.mxu1 %v511_v32  ;;  %801 = vmatmul.mubr.bf16.vlgmr.msra.gmra.mxu0 %v508_v33 }
  0xee   :  { %841 = vmatmul.mubr.bf16.vlgmr.msra.gmra.mxu1 %v510_v34  ;;  %1159 = vmatprep.mubr.msk.bf16.mxu0 %vm1229_vm5, %v1227_v23 }
  0xef   :  { %1167 = vmatprep.mubr.msk.bf16.mxu1 %vm1229_vm5, %v1227_v23  ;;  %1158 = vmatpush3.bf16.msra.mxu0 %v879_v38 }
  0xf0   :  { %1164 = vmatpush3.bf16.msra.mxu1 %v1224_v39 }
  0xf1   :  { %1165 = vmatprep.subr.bf16.mxu1 %v1227_v23  ;;  %v1225_v23 = vld [vmem:[%s1426_s2] sm:$0xff]  }
  0xf4   :  { %1166 = vmatpush3.bf16.msra.mxu1 %v1225_v23 }
 0x1ad   :  { %v1124_v40 = vpop.f32.mrf.mxu0 }
 0x1ae   :  { %v1146_v41 = vpop.f32.mrf.mxu1 }
 0x1af   :  { %v1125_v42 = vpop.f32.mrf.mxu0 }
 0x1b0   :  { %v1147_v43 = vpop.f32.mrf.mxu1  ;;  %v1126_v44 = vadd.f32 %v1125_v42, %v1124_v40 }
 0x1b1   :  { %v1148_v45 = vadd.f32 %v1147_v43, %v1146_v41  ;;  %v1127_v46 = vpop.f32.mrf.mxu0 }
 0x1b2   :  { %v1149_v47 = vpop.f32.mrf.mxu1 }
 0x1b3   :  { %v843_v48 = vadd.f32 %v1148_v45, %v1126_v44  ;;  %v1128_v49 = vpop.f32.mrf.mxu0 }
 0x1b4   :  { %v1150_v50 = vpop.f32.mrf.mxu1 }
 0x1b5   :  { %v848_v51 = vpack.c.bf16 %v843_v48, %v843_v48 }
 0x1b7   :  { %857 = vxpose.xlu0.c.b16.start.end [1/1] (short) (narrow) %v848_v51, 16 }
 0x219   :  { %v865_v52 = vpop.trf.xlu0 }
 0x21a   :  { %1160 = vmatmul.mubr.msk.bf16.vlgmr.msra.gmra.mxu0 %vm873_vm6, %v865_v52 }
 0x2da   :  { %v915_v54 = vpop.f32.mrf.mxu0 }
 0x2db   :  { %v916_v55 = vadd.f32 %v1060_v53, %v915_v54 }
 0x2dc   :  { %v1161_v56 = vpop.f32.mrf.mxu0 }
 0x2dd   :  { %v921_v57 = vmax.f32 %v916_v55, 0.0 }
 0x2de   :  { %v918_v58 = vpop.f32.mrf.mxu0 }
 0x2df   :  { %v922_v59 = vpack.c.bf16 %v921_v57, %v921_v57 }
 0x2e0   :  { %v1162_v60 = vpop.f32.mrf.mxu0 }
 0x2e1   :  { %1168 = vmatmul.mubr.msk.bf16.vlgmr.msra.gmra.mxu1 %vm946_vm7, %v922_v59 }
 0x3a1   :  { %v984_v62 = vpop.f32.mrf.mxu1 }
 0x3a2   :  { %v985_v63 = vadd.f32 %v1062_v61, %v984_v62 }
 0x3a3   :  { %v1169_v0 = vpop.f32.mrf.mxu1 }
 0x3a4   :  { %990 = vst [vmem:[%s1430_s6] sm:$0x3] %v985_v63 }
 0x3a5   :  { %v987_v1 = vpop.f32.mrf.mxu1 }
 0x3a7   :  { %v1170_v2 = vpop.f32.mrf.mxu1 }

</bundles_post_ra>
